<compile_context>
chip_gen: v6e
topology: v6e:2x2x1
jax: 0.10.0
libtpu: 0.0.40
codegen_flags: <defaults>
</compile_context>

<pallas_src>
import functools

import jax
import jax.numpy as jnp
from jax import lax
from jax.experimental import pallas as pl


_AUX = 128  # lane-dense width of the packed prob/idx block appended to logits


# ----------------------------- Pallas kernel -------------------------------

def _nlu_fused_kernel(x_ref, w_ref, b_ref, out_ref, *, offsets, sizes, cpad):
    B = x_ref.shape[0]
    S = len(sizes)

    # Single fused linear (embed folded into classifiers offline):
    #   logits = x @ (We @ Wc) + (be @ Wc + bc)      (B, Cpad), Cpad % 128 == 0
    # Padded classifier columns have zero weight/bias -> logits exactly 0 there.
    logits = (jnp.dot(x_ref[...], w_ref[...], preferred_element_type=jnp.float32)
              + b_ref[...])

    col = lax.broadcasted_iota(jnp.int32, (1, cpad), 1)        # global lane idx
    neg = jnp.float32(-1e30)
    big = jnp.int32(cpad)

    # Per-slot lane masks, built from iota at trace time (S small, static).
    masks = [(col >= lo) & (col < lo + n) for lo, n in zip(offsets, sizes)]

    # ---- segment max: one XLU max per slot, broadcast back to its lanes ----
    slot_max = [jnp.max(jnp.where(m, logits, neg), axis=-1, keepdims=True)
                for m in masks]                                # S x (B, 1)
    max_lanes = jnp.zeros_like(logits)                         # pad lanes -> 0
    for m, mx in zip(masks, slot_max):
        max_lanes = jnp.where(m, mx, max_lanes)                # (B, Cpad)

    # ---- one full-width EUP exp; segment sums on the (idle) MXU ------------
    z = jnp.exp(logits - max_lanes)                            # (B, Cpad)
    seg_t = jnp.concatenate([m.astype(jnp.float32) for m in masks],
                            axis=0)                            # (S, Cpad)
    denom = jnp.einsum('bc,sc->bs', z, seg_t,
                       preferred_element_type=jnp.float32)     # (B, S)
    # max(softmax(x)) == exp(x_max - x_max) / denom == 1 / denom.
    prob_all = pl.reciprocal(denom, approx=False)              # exact recip

    # ---- argmax: one shared compare, one masked min per slot ---------------
    hit = logits >= max_lanes                                  # (B, Cpad)
    cand = jnp.where(hit, col, big)                            # global lane id
    idx_cols = [jnp.min(jnp.where(m, cand, big), axis=-1, keepdims=True) - lo
                for m, lo in zip(masks, offsets)]              # S x (B, 1)
    idx_f = jnp.concatenate(idx_cols, axis=-1).astype(jnp.float32)   # (B, S)

    # ---- lane-dense stores: logits slab + one packed 128-lane aux vreg -----
    pad = jnp.zeros((B, _AUX - 2 * S), jnp.float32)
    aux = jnp.concatenate([prob_all, idx_f, pad], axis=-1)     # (B, 128)
    out_ref[:, :cpad] = logits                                 # unmasked store
    out_ref[:, cpad:] = aux                                    # unmasked store


# ------------------------------ Wrapper -------------------------------------

@functools.lru_cache(maxsize=None)
def _build_nlu_fn(B, cpad, offsets, sizes):
    """Build + jit the fused NLU call once per (B, Cpad, offsets, sizes)."""
    S = len(sizes)
    assert 2 * S <= _AUX, "too many slots to pack into one aux vreg"
    kernel = functools.partial(_nlu_fused_kernel,
                               offsets=offsets, sizes=sizes, cpad=cpad)
    # No grid: the whole problem is one block / one invocation -> no per-step
    # DMA or loop overhead, nothing to mark parallel/arbitrary.
    # TODO(synk): at production sizes, tile B/Cpad with BlockSpecs, size blocks
    #             against v7x's 64 MiB VMEM and set vmem_limit_bytes.
    call = pl.pallas_call(
        kernel,
        out_shape=jax.ShapeDtypeStruct((B, cpad + _AUX), jnp.float32),
    )

    @jax.jit
    def fn(x, w_fused, b_fused):
        out = call(x, w_fused, b_fused)
        logits = out[:, :cpad]                                  # (B, Cpad)
        prob = out[:, cpad:cpad + S]                            # (B, S)
        idx = out[:, cpad + S:cpad + 2 * S].astype(jnp.int32)   # (B, S)
        return logits, prob, idx

    return fn


def nlu_kernel_call(latent_var, w_fused, b_fused, offsets, sizes):
    """One cached, jitted pallas_call: fused linear + softmax-max/argmax."""
    B = latent_var.shape[0]
    cpad = int(w_fused.shape[1])
    fn = _build_nlu_fn(B, cpad,
                       tuple(int(o) for o in offsets),
                       tuple(int(n) for n in sizes))
    return fn(latent_var, w_fused, b_fused)


def nlu_forward(latent_var, params, slot_list, ontology, offsets):
    """Full NLU forward (teacher-force mode)."""
    slot_sizes = [len(ontology[s]) + 1 for s in slot_list]
    logits, probs, idxs = nlu_kernel_call(
        latent_var, params["w_fused"], params["b_fused"], offsets, slot_sizes)

    # Only idx (B*S int32, a few bytes) is needed on host for the string decode;
    # logits/probs stay as device arrays.
    # TODO(synk): in a serving loop, overlap this host sync with the next
    #             request's dispatch (or batch requests into a larger B) --
    #             it serializes an already launch-latency-bound op.
    idxs_h = jax.device_get(idxs)                 # (B, S)

    B = latent_var.shape[0]
    output_dist = {}
    output_seq = [[] for _ in range(B)]
    for s, slot in enumerate(slot_list):
        value_list = ontology[slot]
        n_class = len(value_list) + 1
        lo = offsets[s]
        output_dist[slot] = logits[:, lo:lo + n_class]
        for b in range(B):
            value_idx = int(idxs_h[b, s])
            if value_idx < len(value_list):
                output_seq[b].append(slot)
                output_seq[b].append(value_list[value_idx])
                output_seq[b].append('|')
    for b in range(B):
        output_seq[b] = ' '.join(output_seq[b][:-1]) if output_seq[b] else ''
    return {'decode': output_seq, 'output_dist': output_dist,
            'mode': 'teacher_force'}


# ------------------------------- Setup ---------------------------------------

def make_params(key, input_size, embed_size, slot_sizes):
    """Deterministic synthetic parameters (no checkpoint)."""
    S = len(slot_sizes)
    offsets, off = [], 0
    for n in slot_sizes:
        offsets.append(off)
        off += n
    c_tot = off
    c_pad = ((c_tot + 127) // 128) * 128          # lane-dense classifier width

    k = jax.random.split(key, 2 + 2 * S)
    w_embed = (jax.random.normal(k[0], (input_size, embed_size), jnp.float32)
               * (1.0 / jnp.sqrt(input_size)))
    b_embed = jax.random.normal(k[1], (1, embed_size), jnp.float32) * 0.01

    w_all = jnp.zeros((embed_size, c_pad), jnp.float32)
    b_all = jnp.zeros((1, c_pad), jnp.float32)
    for s, n_class in enumerate(slot_sizes):
        w_s = (jax.random.normal(k[2 + 2 * s], (embed_size, n_class), jnp.float32)
               * (1.0 / jnp.sqrt(embed_size)))
        b_s = jax.random.normal(k[3 + 2 * s], (1, n_class), jnp.float32) * 0.01
        lo = offsets[s]
        w_all = w_all.at[:, lo:lo + n_class].set(w_s)
        b_all = b_all.at[:, lo:lo + n_class].set(b_s)

    # Offline fold of the embed layer into the classifiers (exact composition
    # of linear maps; `e` is never an output of the module).
    w_fused = w_embed @ w_all                     # (Z, Cpad)
    b_fused = b_embed @ w_all + b_all             # (1, Cpad)
    # TODO(synk): on v6e/v7x, optionally store w_fused (and cast x) as bf16 with
    #             f32 accumulation if a ~1e-3 logits tolerance is acceptable;
    #             keep f32 on v5e (no bf16 VPU/EUP).

    params = dict(w_embed=w_embed, b_embed=b_embed, w_all=w_all, b_all=b_all,
                  w_fused=w_fused, b_fused=b_fused)
    return params, offsets


if __name__ == "__main__":
    # small synthetic "dataset"/"config"
    ontology = {
        "area":  ["north", "south", "east", "west", "centre"],
        "food":  ["italian", "chinese", "indian", "thai", "french", "korean", "mexican"],
        "price": ["cheap", "moderate", "expensive"],
    }
    slot_list = ["area", "food", "price"]
    slot_sizes = [len(ontology[s]) + 1 for s in slot_list]   # +1 for "none"

    B = 2            # batch
    INPUT_SIZE = 32  # latent dim Z
    EMBED_SIZE = 16  # config.embed_size (config.nlu_embed = True)

    key = jax.random.PRNGKey(0)
    k_x, k_p = jax.random.split(key)
    latent_var = jax.random.normal(k_x, (B, INPUT_SIZE), jnp.float32)
    params, offsets = make_params(k_p, INPUT_SIZE, EMBED_SIZE, slot_sizes)

    out = nlu_forward(latent_var, params, slot_list, ontology, offsets)
    jax.block_until_ready([out["output_dist"][s] for s in slot_list])

    # quick sanity check against plain-JAX (unfolded) reference
    logits_k, prob_k, idx_k = nlu_kernel_call(
        latent_var, params["w_fused"], params["b_fused"], offsets, slot_sizes)
    jax.block_until_ready((logits_k, prob_k, idx_k))

    e_ref = latent_var @ params["w_embed"] + params["b_embed"]
    logits_ref_all = e_ref @ params["w_all"] + params["b_all"]
    for s, slot in enumerate(slot_list):
        lo, n = offsets[s], slot_sizes[s]
        ref = logits_ref_all[:, lo:lo + n]
        # atol covers the (exact-in-math, fp-reordered) offline weight fold.
        assert jnp.allclose(out["output_dist"][slot], ref,
                            atol=1e-4, rtol=1e-4), slot
        assert jnp.allclose(logits_k[:, lo:lo + n], ref,
                            atol=1e-4, rtol=1e-4), slot
        ref_sm = jax.nn.softmax(ref, axis=1)
        assert bool(jnp.all(idx_k[:, s] == jnp.argmax(ref, axis=1))), slot
        assert jnp.allclose(prob_k[:, s], jnp.max(ref_sm, axis=1),
                            atol=1e-4, rtol=1e-4), slot

    print("KERNEL_OK")
</pallas_src>

<mosaic_0001>
module attributes {stable_mosaic.version = 11 : i64} {
  func.func @_nlu_fused_kernel(%arg0: memref<2x32xf32, #tpu.memory_space<vmem>>, %arg1: memref<32x128xf32, #tpu.memory_space<vmem>>, %arg2: memref<1x128xf32, #tpu.memory_space<vmem>>, %arg3: memref<2x256xf32, #tpu.memory_space<vmem>>) attributes {dimension_semantics = [], scalar_prefetch = 0 : i64, scratch_operands = 0 : i64, tpu.core_type = #tpu.core_type<tc>} {
    %c0 = arith.constant 0 : index
    %c0_0 = arith.constant 0 : index
    %0 = vector.load %arg0[%c0, %c0_0] : memref<2x32xf32, #tpu.memory_space<vmem>>, vector<2x32xf32>
    %c0_1 = arith.constant 0 : index
    %c0_2 = arith.constant 0 : index
    %1 = vector.load %arg1[%c0_1, %c0_2] : memref<32x128xf32, #tpu.memory_space<vmem>>, vector<32x128xf32>
    %cst = arith.constant dense<0.000000e+00> : vector<2x128xf32>
    %2 = tpu.matmul %0, %1, %cst {dimension_numbers = #tpu.dot_dimension_numbers<[1], [0], [0], [1], [0, 0, 1, 1], [], []>} : vector<2x32xf32>, vector<32x128xf32>, vector<2x128xf32> -> vector<2x128xf32>
    %c0_3 = arith.constant 0 : index
    %c0_4 = arith.constant 0 : index
    %3 = vector.load %arg2[%c0_3, %c0_4] : memref<1x128xf32, #tpu.memory_space<vmem>>, vector<1x128xf32>
    %4 = vector.broadcast %3 : vector<1x128xf32> to vector<2x128xf32>
    %5 = arith.addf %2, %4 : vector<2x128xf32>
    %6 = tpu.iota {dimensions = array<i32: 1>} : vector<1x128xi32>
    %c0_i32 = arith.constant 0 : i32
    %7 = vector.broadcast %c0_i32 : i32 to vector<1x128xi32>
    %8 = arith.cmpi sge, %6, %7 : vector<1x128xi32>
    %c6_i32 = arith.constant 6 : i32
    %9 = vector.broadcast %c6_i32 : i32 to vector<1x128xi32>
    %10 = arith.cmpi slt, %6, %9 : vector<1x128xi32>
    %11 = arith.andi %8, %10 : vector<1x128xi1>
    %c6_i32_5 = arith.constant 6 : i32
    %12 = vector.broadcast %c6_i32_5 : i32 to vector<1x128xi32>
    %13 = arith.cmpi sge, %6, %12 : vector<1x128xi32>
    %c14_i32 = arith.constant 14 : i32
    %14 = vector.broadcast %c14_i32 : i32 to vector<1x128xi32>
    %15 = arith.cmpi slt, %6, %14 : vector<1x128xi32>
    %16 = arith.andi %13, %15 : vector<1x128xi1>
    %c14_i32_6 = arith.constant 14 : i32
    %17 = vector.broadcast %c14_i32_6 : i32 to vector<1x128xi32>
    %18 = arith.cmpi sge, %6, %17 : vector<1x128xi32>
    %c18_i32 = arith.constant 18 : i32
    %19 = vector.broadcast %c18_i32 : i32 to vector<1x128xi32>
    %20 = arith.cmpi slt, %6, %19 : vector<1x128xi32>
    %21 = arith.andi %18, %20 : vector<1x128xi1>
    %cst_7 = arith.constant -1.000000e+30 : f32
    %22 = vector.shape_cast %11 : vector<1x128xi1> to vector<1x128xi1>
    %23 = vector.broadcast %22 : vector<1x128xi1> to vector<2x128xi1>
    %24 = vector.broadcast %cst_7 : f32 to vector<2x128xf32>
    %25 = arith.select %23, %5, %24 : vector<2x128xi1>, vector<2x128xf32>
    %cst_8 = arith.constant dense<0xFF800000> : vector<2xf32>
    %26 = vector.multi_reduction <maximumf>, %25, %cst_8 [1] : vector<2x128xf32> to vector<2xf32>
    %27 = vector.shape_cast %26 : vector<2xf32> to vector<2x1xf32>
    %cst_9 = arith.constant -1.000000e+30 : f32
    %28 = vector.shape_cast %16 : vector<1x128xi1> to vector<1x128xi1>
    %29 = vector.broadcast %28 : vector<1x128xi1> to vector<2x128xi1>
    %30 = vector.broadcast %cst_9 : f32 to vector<2x128xf32>
    %31 = arith.select %29, %5, %30 : vector<2x128xi1>, vector<2x128xf32>
    %cst_10 = arith.constant dense<0xFF800000> : vector<2xf32>
    %32 = vector.multi_reduction <maximumf>, %31, %cst_10 [1] : vector<2x128xf32> to vector<2xf32>
    %33 = vector.shape_cast %32 : vector<2xf32> to vector<2x1xf32>
    %cst_11 = arith.constant -1.000000e+30 : f32
    %34 = vector.shape_cast %21 : vector<1x128xi1> to vector<1x128xi1>
    %35 = vector.broadcast %34 : vector<1x128xi1> to vector<2x128xi1>
    %36 = vector.broadcast %cst_11 : f32 to vector<2x128xf32>
    %37 = arith.select %35, %5, %36 : vector<2x128xi1>, vector<2x128xf32>
    %cst_12 = arith.constant dense<0xFF800000> : vector<2xf32>
    %38 = vector.multi_reduction <maximumf>, %37, %cst_12 [1] : vector<2x128xf32> to vector<2xf32>
    %39 = vector.shape_cast %38 : vector<2xf32> to vector<2x1xf32>
    %cst_13 = arith.constant 0.000000e+00 : f32
    %40 = vector.broadcast %cst_13 : f32 to vector<2x128xf32>
    %41 = vector.shape_cast %11 : vector<1x128xi1> to vector<1x128xi1>
    %42 = vector.broadcast %41 : vector<1x128xi1> to vector<2x128xi1>
    %43 = vector.shape_cast %27 : vector<2x1xf32> to vector<2x1xf32>
    %44 = vector.broadcast %43 : vector<2x1xf32> to vector<2x128xf32>
    %45 = arith.select %42, %44, %40 : vector<2x128xi1>, vector<2x128xf32>
    %46 = vector.shape_cast %16 : vector<1x128xi1> to vector<1x128xi1>
    %47 = vector.broadcast %46 : vector<1x128xi1> to vector<2x128xi1>
    %48 = vector.shape_cast %33 : vector<2x1xf32> to vector<2x1xf32>
    %49 = vector.broadcast %48 : vector<2x1xf32> to vector<2x128xf32>
    %50 = arith.select %47, %49, %45 : vector<2x128xi1>, vector<2x128xf32>
    %51 = vector.shape_cast %21 : vector<1x128xi1> to vector<1x128xi1>
    %52 = vector.broadcast %51 : vector<1x128xi1> to vector<2x128xi1>
    %53 = vector.shape_cast %39 : vector<2x1xf32> to vector<2x1xf32>
    %54 = vector.broadcast %53 : vector<2x1xf32> to vector<2x128xf32>
    %55 = arith.select %52, %54, %50 : vector<2x128xi1>, vector<2x128xf32>
    %56 = arith.subf %5, %55 : vector<2x128xf32>
    %57 = math.exp %56 : vector<2x128xf32>
    %58 = arith.extui %11 : vector<1x128xi1> to vector<1x128xi32>
    %59 = arith.sitofp %58 : vector<1x128xi32> to vector<1x128xf32>
    %60 = arith.extui %16 : vector<1x128xi1> to vector<1x128xi32>
    %61 = arith.sitofp %60 : vector<1x128xi32> to vector<1x128xf32>
    %62 = arith.extui %21 : vector<1x128xi1> to vector<1x128xi32>
    %63 = arith.sitofp %62 : vector<1x128xi32> to vector<1x128xf32>
    %64 = tpu.concatenate %59, %61, %63 in 0 : vector<1x128xf32>, vector<1x128xf32>, vector<1x128xf32> -> vector<3x128xf32>
    "tpu.trace_start"() <{level = 10 : i32, message = "bc,sc->bs"}> : () -> ()
    %cst_14 = arith.constant dense<0.000000e+00> : vector<2x3xf32>
    %65 = tpu.matmul %57, %64, %cst_14 {dimension_numbers = #tpu.dot_dimension_numbers<[1], [1], [0], [0], [0, 0, 1, 0], [], []>} : vector<2x128xf32>, vector<3x128xf32>, vector<2x3xf32> -> vector<2x3xf32>
    "tpu.trace_stop"() : () -> ()
    %66 = tpu.reciprocal %65 : vector<2x3xf32> -> vector<2x3xf32>
    %67 = arith.cmpf oge, %5, %55 : vector<2x128xf32>
    %c128_i32 = arith.constant 128 : i32
    %68 = vector.shape_cast %6 : vector<1x128xi32> to vector<1x128xi32>
    %69 = vector.broadcast %68 : vector<1x128xi32> to vector<2x128xi32>
    %70 = vector.broadcast %c128_i32 : i32 to vector<2x128xi32>
    %71 = arith.select %67, %69, %70 : vector<2x128xi1>, vector<2x128xi32>
    %c128_i32_15 = arith.constant 128 : i32
    %72 = vector.shape_cast %11 : vector<1x128xi1> to vector<1x128xi1>
    %73 = vector.broadcast %72 : vector<1x128xi1> to vector<2x128xi1>
    %74 = vector.broadcast %c128_i32_15 : i32 to vector<2x128xi32>
    %75 = arith.select %73, %71, %74 : vector<2x128xi1>, vector<2x128xi32>
    %cst_16 = arith.constant dense<2147483647> : vector<2xi32>
    %76 = vector.multi_reduction <minsi>, %75, %cst_16 [1] : vector<2x128xi32> to vector<2xi32>
    %77 = vector.shape_cast %76 : vector<2xi32> to vector<2x1xi32>
    %c0_i32_17 = arith.constant 0 : i32
    %78 = vector.broadcast %c0_i32_17 : i32 to vector<2x1xi32>
    %79 = arith.subi %77, %78 : vector<2x1xi32>
    %c128_i32_18 = arith.constant 128 : i32
    %80 = vector.shape_cast %16 : vector<1x128xi1> to vector<1x128xi1>
    %81 = vector.broadcast %80 : vector<1x128xi1> to vector<2x128xi1>
    %82 = vector.broadcast %c128_i32_18 : i32 to vector<2x128xi32>
    %83 = arith.select %81, %71, %82 : vector<2x128xi1>, vector<2x128xi32>
    %cst_19 = arith.constant dense<2147483647> : vector<2xi32>
    %84 = vector.multi_reduction <minsi>, %83, %cst_19 [1] : vector<2x128xi32> to vector<2xi32>
    %85 = vector.shape_cast %84 : vector<2xi32> to vector<2x1xi32>
    %c6_i32_20 = arith.constant 6 : i32
    %86 = vector.broadcast %c6_i32_20 : i32 to vector<2x1xi32>
    %87 = arith.subi %85, %86 : vector<2x1xi32>
    %c128_i32_21 = arith.constant 128 : i32
    %88 = vector.shape_cast %21 : vector<1x128xi1> to vector<1x128xi1>
    %89 = vector.broadcast %88 : vector<1x128xi1> to vector<2x128xi1>
    %90 = vector.broadcast %c128_i32_21 : i32 to vector<2x128xi32>
    %91 = arith.select %89, %71, %90 : vector<2x128xi1>, vector<2x128xi32>
    %cst_22 = arith.constant dense<2147483647> : vector<2xi32>
    %92 = vector.multi_reduction <minsi>, %91, %cst_22 [1] : vector<2x128xi32> to vector<2xi32>
    %93 = vector.shape_cast %92 : vector<2xi32> to vector<2x1xi32>
    %c14_i32_23 = arith.constant 14 : i32
    %94 = vector.broadcast %c14_i32_23 : i32 to vector<2x1xi32>
    %95 = arith.subi %93, %94 : vector<2x1xi32>
    %96 = tpu.concatenate %79, %87, %95 in 1 : vector<2x1xi32>, vector<2x1xi32>, vector<2x1xi32> -> vector<2x3xi32>
    %97 = arith.sitofp %96 : vector<2x3xi32> to vector<2x3xf32>
    %cst_24 = arith.constant 0.000000e+00 : f32
    %98 = vector.broadcast %cst_24 : f32 to vector<2x122xf32>
    %99 = tpu.concatenate %66, %97, %98 in 1 : vector<2x3xf32>, vector<2x3xf32>, vector<2x122xf32> -> vector<2x128xf32>
    %c0_25 = arith.constant 0 : index
    %c0_26 = arith.constant 0 : index
    %100 = vector.load %arg3[%c0_25, %c0_26] : memref<2x256xf32, #tpu.memory_space<vmem>>, vector<2x128xf32>
    tpu.vector_store %arg3[%c0_25, %c0_26], %5 {strides = array<i32>} : memref<2x256xf32, #tpu.memory_space<vmem>>, vector<2x128xf32>,
    %c0_27 = arith.constant 0 : index
    %c128 = arith.constant 128 : index
    %101 = vector.load %arg3[%c0_27, %c128] : memref<2x256xf32, #tpu.memory_space<vmem>>, vector<2x128xf32>
    tpu.vector_store %arg3[%c0_27, %c128], %99 {strides = array<i32>} : memref<2x256xf32, #tpu.memory_space<vmem>>, vector<2x128xf32>,
    return
  }
}

</mosaic_0001>

<bundles_post_ra>
// kernel: fn.1
= control target key start
LH: loop header
LB: loop body
LE: loop exit
PB: predicated region body
PF: predicated region fallthrough
CT: control target
= control target key end

     0   :  { %8 = vsyncpa [#allocation3], 0  ;;  %s474_s0 = inlined_call_operand.hbm [shape: f32[2,32], index: 0, kind: input, shape index: {}]   ;;  %s475_s1 = inlined_call_operand.hbm [shape: f32[32,128], index: 1, kind: input, shape index: {}]   ;;  %s476_s2 = inlined_call_operand.vmem [shape: f32[1,128], index: 2, kind: input, shape index: {}]   ;;  %s477_s3 = inlined_call_operand.vmem [shape: f32[2,256], index: 3, kind: output, shape index: {}]  }
   0x1   :  { %9 = vsyncpa [#allocation5], 0  ;;  %s397_s12 = smov [#allocation2]   ;;  %s398_s14 = smov [#allocation4]  }
   0x2   :  { %s16_s13 = sshll.u32 %s397_s12, 4  ;;  %s25_s15 = sshll.u32 %s398_s14, 4  ;;  %s17_s13 = int_to_ptr.vmem [resolvable:$true] %s16_s13  ;;  %s26_s15 = int_to_ptr.vmem [resolvable:$true] %s25_s15 }
   0x3   :  { %s361_s16 = scalar_lea.vmem %s17_s13, 32  ;;  %p366_p1 = scmp.lt.s32.totalorder %s17_s13, %s17_s13 }
   0x4   :  { %p362_p0 = scmp.ne.s32.totalorder %s17_s13, %s361_s16  ;;  %p367_p2 = scmp.lt.s32.totalorder %s361_s16, %s361_s16 }
   0x6   :  { %p368_p3 = por %p367_p2, %p366_p1 }
   0x8   :  { %p369_p4 = pnand %p368_p3, %p362_p0 }
   0xa   :  { %372 = shalt.err (!%p369_p4)
}
   0xb   :  { %19 = dma.hbm_to_vmem [thread:$0]  %s474_s0, 32, %s17_s13, [#allocation3]  }
   0xc   :  { %s381_s19 = scalar_lea.vmem %s26_s15, 512  ;;  %p386_p6 = scmp.lt.s32.totalorder %s26_s15, %s26_s15 }
   0xd   :  { %p382_p5 = scmp.ne.s32.totalorder %s26_s15, %s381_s19  ;;  %p387_p7 = scmp.lt.s32.totalorder %s381_s19, %s381_s19 }
   0xf   :  { %p388_p8 = por %p387_p7, %p386_p6 }
  0x11   :  { %p389_p9 = pnand %p388_p8, %p382_p5 }
  0x13   :  { %392 = shalt.err (!%p389_p9)
}
  0x14   :  { %s399_s20 = smov 128   ;;  %s400_s21 = smov 8  }
  0x15   :  { %31 = dma.hbm_to_vmem [thread:$0]  %s475_s1, 512, %s26_s15, [#allocation5], %s399_s20, %s399_s20, %s400_s21  }
  0x16   :  { %393 = dma.done.wait [#allocation3], 32  }
  0x17   :  { %394 = vsyncadd [#allocation3], 4294967264 }
  0x18   :  { %395 = dma.done.wait [#allocation5], 512  }
  0x19   :  { %396 = vsyncadd [#allocation5], 4294966784  ;;  %v401_v0 = vmov 0.0   ;;  %vm402_vm0 = vmmov 0   ;;  %v44_v1 = vld [vmem:[#allocation4 + $0x18] sm:$0xff]  ;;  %v43_v2 = vld [vmem:[#allocation4 + $0x10] sm:$0xff]  ;;  %v126_v6 = vlaneseq }
  0x1a   :  { %326 = vmatprep.subr.mxu0 %v401_v0  ;;  %334 = vmatprep.mubr.msk.f32.mxu0 %vm402_vm0, %v401_v0  ;;  %v42_v3 = vld [vmem:[#allocation4 + $0x8] sm:$0xff]  ;;  %v41_v4 = vld [vmem:[#allocation4] sm:$0xff]  ;;  %v40_v5 = vld [vmem:[#allocation2] sm:$0x3]  ;;  %vm52_vm1 = vcmask 261120   ;;  %vm140_vm8 = vcmask 1041408  }
  0x1b   :  { %337 = vmatprep.subr.mxu1 %v401_v0  ;;  %339 = vmatprep.mubr.msk.f32.mxu1 %vm402_vm0, %v401_v0  ;;  %v127_v7 = vand.u32 127, %v126_v6  ;;  %v312_v8 = vld [vmem:[%s476_s2] ss:$0 sm:$0xff]  ;;  %vm165_vm10 = vcmask 1040384   ;;  %vm291_vm15 = vcmask 7168   ;;  %vm293_vm0 = vcmask 15360  }
  0x1c   :  { %327 = vmatpush3.msra.mxu0 %v44_v1  ;;  %s403_s2 = smov 3  }
  0x1d   :  { %328 = vmatprep.subr.mxu0 %v401_v0  ;;  %vm134_vm2 = vcmp.ge.s32.totalorder %v127_v7, 14  ;;  %vm135_vm3 = vcmp.lt.s32.totalorder %v127_v7, 18  ;;  %vm131_vm4 = vcmp.ge.s32.totalorder %v127_v7, 6  ;;  %vm132_vm5 = vcmp.lt.s32.totalorder %v127_v7, 14 }
  0x1e   :  { %329 = vmatpush3.msra.mxu0 %v43_v2  ;;  %vm433_vm6 = vmand %vm134_vm2, %vm135_vm3  ;;  %vm129_vm7 = vcmp.lt.s32.totalorder %v127_v7, 6  ;;  %vm302_vm2 = vcmask 48128  }
  0x1f   :  { %330 = vmatprep.subr.mxu0 %v401_v0  ;;  %vm437_vm9 = vmand %vm131_vm4, %vm132_vm5  ;;  %v314_v20 = vsel %vm129_vm7, 1.0, %v401_v0  ;;  %v316_v22 = vsel %vm433_vm6, 1.0, %v401_v0 }
  0x20   :  { %331 = vmatpush3.msra.mxu0 %v42_v3  ;;  %v315_v21 = vsel %vm437_vm9, 1.0, %v401_v0 }
  0x21   :  { %332 = vmatprep.subr.mxu0 %v401_v0  ;;  %v166_v23 = vsel %vm165_vm10, %v314_v20, %v315_v21 }
  0x22   :  { %333 = vmatpush3.msra.mxu0 %v41_v4  ;;  %v167_v24 = vsel %vm140_vm8, %v166_v23, %v316_v22 }
  0x23   :  { %335 = vmatmul.mubr.msk.f32.vlgmr.msra.gmra.mxu0 %vm52_vm1, %v40_v5  ;;  %338 = vmatpush3.xpose.msra.mxu1 %v167_v24  ;;  %vm300_vm1 = vcmask 23552  }
  0xe3   :  { %v122_v9 = vpop.f32.mrf.mxu0 }
  0xe4   :  { %v123_v11 = vadd.f32 %v312_v8, %v122_v9 }
  0xe5   :  { %v336_v12 = vpop.f32.mrf.mxu0 }
  0xe6   :  { %304 = vst [vmem:[%s477_s3] sm:$0x3] %v123_v11  ;;  %v152_v14 = vsel %vm433_vm6, %v123_v11, -1e+30  ;;  %v139_v15 = vsel %vm129_vm7, %v123_v11, -1e+30 }
  0xe7   :  { %v153_v16 = vsel %vm140_vm8, %v152_v14, -inf  ;;  %v141_v17 = vsel %vm140_vm8, %v139_v15, -inf  ;;  %v146_v18 = vsel %vm437_vm9, %v123_v11, -1e+30 }
  0xe8   :  { %154 = vmax.xlane.f32.xlu1 %v153_v16  ;;  %142 = vmax.xlane.f32.xlu0 %v141_v17  ;;  %v147_v19 = vsel %vm140_vm8, %v146_v18, -inf }
  0xec   :  { %148 = vmax.xlane.f32.xlu0 %v147_v19 }
 0x171   :  { %v143_v25 = vpop.xlane.xlu0 %142  ;;  %v155_v28 = vpop.xlane.xlu1 %154 }
 0x172   :  { %v156_v26 = vsel %vm129_vm7, %v143_v25, 0.0 }
 0x175   :  { %v149_v27 = vpop.xlane.xlu0 %148 }
 0x176   :  { %v157_v29 = vsel %vm437_vm9, %v149_v27, %v156_v26 }
 0x177   :  { %v158_v30 = vsel %vm433_vm6, %v155_v28, %v157_v29 }
 0x178   :  { %v159_v31 = vsub.f32 %v123_v11, %v158_v30  ;;  %vm239_vm11 = vcmp.ge.f32.partialorder %v123_v11, %v158_v30 }
 0x179   :  { %v240_v32 = vsel %vm239_vm11, %v127_v7, 128 }
 0x17a   :  { %v160_v33 = vmul.f32 1.442695, %v159_v31  ;;  %v274_v34 = vsel %vm433_vm6, %v240_v32, 128  ;;  %v257_v35 = vsel %vm437_vm9, %v240_v32, 128  ;;  %v241_v36 = vsel %vm129_vm7, %v240_v32, 128 }
 0x17b   :  { %v275_v37 = vsel %vm140_vm8, %v274_v34, 2147483647  ;;  %v258_v38 = vsel %vm140_vm8, %v257_v35, 2147483647  ;;  %v242_v39 = vsel %vm140_vm8, %v241_v36, 2147483647 }
 0x17c   :  { %349 = vpow2.f32 %v160_v33  ;;  %v277_v40 = vshra.s32 %v275_v37, 16  ;;  %v260_v41 = vshra.s32 %v258_v38, 16  ;;  %v244_v44 = vshra.s32 %v242_v39, 16 }
 0x17d   :  { %v259_v47 = vand.u32 65535, %v258_v38  ;;  %v276_v48 = vand.u32 65535, %v275_v37  ;;  %v243_v53 = vand.u32 65535, %v242_v39 }
 0x17e   :  { %v279_v42 = vcvt.s32.f32 %v277_v40  ;;  %v262_v43 = vcvt.s32.f32 %v260_v41  ;;  %v246_v45 = vcvt.s32.f32 %v244_v44 }
 0x17f   :  { %v261_v51 = vcvt.s32.f32 %v259_v47  ;;  %v278_v52 = vcvt.s32.f32 %v276_v48  ;;  %v245_v57 = vcvt.s32.f32 %v243_v53 }
 0x180   :  { %280 = vmin.xlane.f32.xlu0 %v279_v42  ;;  %263 = vmin.xlane.f32.xlu1 %v262_v43 }
 0x184   :  { %247 = vmin.xlane.f32.xlu1 %v246_v45 }
 0x189   :  { %v350_v46 = vpop.eup %349 }
 0x18a   :  { %340 = vmatmul.mubr.f32.vlgmr.msra.gmra.mxu1 %v350_v46 }
 0x209   :  { %v281_v49 = vpop.xlane.xlu0 %280  ;;  %v264_v50 = vpop.xlane.xlu1 %263 }
 0x20a   :  { %vm265_vm12 = vcmp.eq.f32.partialorder %v262_v43, %v264_v50  ;;  %vm282_vm13 = vcmp.eq.f32.partialorder %v279_v42, %v281_v49  ;;  %v270_v61 = vcvt.f32.s32 %v264_v50  ;;  %v287_v62 = vcvt.f32.s32 %v281_v49 }
 0x20b   :  { %v266_v54 = vsel %vm265_vm12, %v261_v51, inf  ;;  %v283_v55 = vsel %vm282_vm13, %v278_v52, inf }
 0x20c   :  { %267 = vmin.xlane.f32.xlu0 %v266_v54  ;;  %284 = vmin.xlane.f32.xlu1 %v283_v55  ;;  %v271_v1 = vshll.u32 %v270_v61, 16  ;;  %v288_v5 = vshll.u32 %v287_v62, 16 }
 0x20d   :  { %v248_v56 = vpop.xlane.xlu1 %247 }
 0x20e   :  { %vm249_vm14 = vcmp.eq.f32.partialorder %v246_v45, %v248_v56  ;;  %v254_v2 = vcvt.f32.s32 %v248_v56 }
 0x20f   :  { %v250_v58 = vsel %vm249_vm14, %v245_v57, inf }
 0x210   :  { %251 = vmin.xlane.f32.xlu0 %v250_v58  ;;  %v255_v9 = vshll.u32 %v254_v2, 16 }
 0x24a   :  { %v234_v59 = vpop.f32.mrf.mxu1 }
 0x24b   :  { %351 = vrcp.f32 %v234_v59 }
 0x24c   :  { %v341_v60 = vpop.f32.mrf.mxu1 }
 0x258   :  { %v352_v17 = vpop.eup %351 }
 0x295   :  { %v268_v63 = vpop.xlane.xlu0 %267  ;;  %v285_v0 = vpop.xlane.xlu1 %284 }
 0x296   :  { %v269_v3 = vcvt.f32.s32 %v268_v63  ;;  %v286_v4 = vcvt.f32.s32 %v285_v0 }
 0x298   :  { %v272_v6 = vadd.s32 %v271_v1, %v269_v3  ;;  %v289_v7 = vadd.s32 %v288_v5, %v286_v4 }
 0x299   :  { %v252_v8 = vpop.xlane.xlu0 %251 }
 0x29a   :  { %v253_v10 = vcvt.f32.s32 %v252_v8  ;;  %v317_v11 = vadd.s32 4294967290, %v272_v6  ;;  %v318_v13 = vadd.s32 4294967282, %v289_v7 }
 0x29c   :  { %v256_v12 = vadd.s32 %v255_v9, %v253_v10 }
 0x29e   :  { %v292_v14 = vsel %vm291_vm15, %v256_v12, %v317_v11 }
 0x29f   :  { %v294_v15 = vsel %vm293_vm0, %v292_v14, %v318_v13 }
 0x2a0   :  { %v295_v16 = vcvt.s32.f32 %v294_v15 }
 0x2a2   :  { %297 = vrot.lane.b32.xlu1 %v295_v16, %s403_s2 }
 0x314   :  { %v298_v18 = vpop.permute.xlu1 %297 }
 0x315   :  { %v301_v19 = vsel %vm300_vm1, %v352_v17, %v298_v18 }
 0x316   :  { %v303_v20 = vsel %vm302_vm2, %v301_v19, 0.0 }
 0x317   :  { %305 = vst [vmem:[%s477_s3 + $0x2] sm:$0x3] %v303_v20 }
 0x318   :  { %310 = vsyncpa [#allocation3], 1 }
 0x319   :  { %311 = vsyncpa [#allocation5], 1 }

</bundles_post_ra>
